<compile_context>
chip_gen: v7x
topology: tpu7x:2x2x1
jax: 0.10.0
libtpu: 0.0.40
codegen_flags: <defaults>
</compile_context>

<pallas_src>
import functools

import jax
import jax.numpy as jnp
from jax.experimental import pallas as pl
from jax.experimental.pallas import tpu as pltpu

LANE = 128
SUBLANE = 8


def _round_up(x, m):
    return (x + m - 1) // m * m


def duel_mlp_kernel(
    x_ref,
    wb0_ref, bb0_ref, wb1_ref, bb1_ref,      # base stream (bf16 weights, f32 biases)
    wva_h_ref, bva_h_ref,                    # fused V|A hidden layer  (W, 2W)
    wva_o_ref, bva_o_ref,                    # fused block-diag head   (2W, 128-padded)
    q_ref,
    *, n_actions,
):
    # bf16 into the MXU; f32 accumulation and f32 elementwise (bias/ReLU/epilogue).
    x = x_ref[...].astype(jnp.bfloat16)

    h = jnp.maximum(
        jnp.dot(x, wb0_ref[...], preferred_element_type=jnp.float32) + bb0_ref[...], 0.0)
    h = jnp.maximum(
        jnp.dot(h.astype(jnp.bfloat16), wb1_ref[...],
                preferred_element_type=jnp.float32) + bb1_ref[...], 0.0)

    # Fused V/A hidden layer: one (W, 2W) matmul yields [hv | ha].
    h_va = jnp.maximum(
        jnp.dot(h.astype(jnp.bfloat16), wva_h_ref[...],
                preferred_element_type=jnp.float32) + bva_h_ref[...], 0.0)

    # Fused lane-padded block-diagonal head:
    #   cols [0, n_actions) = A, col n_actions = V, remaining padded cols exact zero.
    out = jnp.dot(h_va.astype(jnp.bfloat16), wva_o_ref[...],
                  preferred_element_type=jnp.float32) + bva_o_ref[...]

    v = out[:, n_actions:n_actions + 1]                              # (TB, 1)
    # Padded columns are exact zeros, so row_sum - V == sum over the real A columns.
    a_mean = (jnp.sum(out, axis=1, keepdims=True) - v) * (1.0 / n_actions)

    # Narrow store: only the real Q columns (last dim == full array dim, so legal).
    q_ref[...] = (out[:, :n_actions] + v - a_mean).astype(q_ref.dtype)


def fuse_params(params, compute_dtype=jnp.bfloat16):
    """Concatenate / pad / bf16-cast the weights ONCE (outside the per-forward path).

    Returns (fused_tuple, n_actions, width). Cache the result and reuse it until the
    underlying parameters change.
    """
    (wb0, bb0, wb1, bb1, wv0, bv0, wv1, bv1, wa0, ba0, wa1, ba1) = params
    width = wb1.shape[0]
    n_actions = ba1.shape[-1]
    out_pad = max(LANE, _round_up(n_actions + 1, LANE))

    # V|A hidden layer fused into one wide matmul: cols [0, W) -> hv, [W, 2W) -> ha.
    w_h = jnp.concatenate([wv0, wa0], axis=1)            # (W, 2W)
    b_h = jnp.concatenate([bv0, ba0], axis=1)            # (1, 2W)

    # Block-diagonal, lane-padded head: A block from the ha rows into cols [0, n_actions),
    # V column from the hv rows into col n_actions, everything else exact zero.
    w_o = jnp.zeros((2 * width, out_pad), jnp.float32)
    w_o = w_o.at[width:, :n_actions].set(wa1)
    w_o = w_o.at[:width, n_actions:n_actions + 1].set(wv1)
    b_o = jnp.zeros((1, out_pad), jnp.float32)
    b_o = b_o.at[:, :n_actions].set(ba1)
    b_o = b_o.at[:, n_actions:n_actions + 1].set(bv1)

    cast = lambda w: w.astype(compute_dtype)
    fused = (cast(wb0), bb0, cast(wb1), bb1, cast(w_h), b_h, cast(w_o), b_o)
    return fused, n_actions, width


def duel_mlp_forward(state, fused, n_actions, *, max_batch_tile=2048,
                     min_split_rows=128):
    """state: (B, F) f32; fused: cached output of fuse_params. Returns (B, n_actions) f32."""
    B, F = state.shape
    width = fused[2].shape[0]                  # fused wb1 is (W, W)
    out_pad = fused[6].shape[-1]

    # Adaptive tiling: bound padding waste to a few rows, keep tiles large (HBM/overhead
    # bound at these widths), and give v7x >= 2 (even) grid steps to use both TCs.
    num_tiles = max(1, pl.cdiv(B, max_batch_tile))
    if num_tiles == 1 and B >= 2 * min_split_rows:
        num_tiles = 2
    if num_tiles > 1 and num_tiles % 2:
        num_tiles += 1
    tb = _round_up(pl.cdiv(B, num_tiles), SUBLANE)
    b_pad = num_tiles * tb
    if b_pad != B:
        state = jnp.pad(state, ((0, b_pad - B), (0, 0)))

    # Weights / biases: full-array blocks with constant index_map -> resident in VMEM
    # across all grid steps while activation tiles pipeline.
    weight_specs = [pl.BlockSpec(p.shape, lambda i: (0, 0)) for p in fused]

    flops = 2 * b_pad * (F * width + width * width
                         + width * 2 * width + 2 * width * out_pad)
    bytes_accessed = int(state.nbytes + sum(int(p.nbytes) for p in fused)
                         + b_pad * n_actions * 4)

    kernel = functools.partial(duel_mlp_kernel, n_actions=n_actions)

    # NOTE: at tb<=2048 total VMEM use is well under every generation's scoped default;
    # only set pltpu.CompilerParams(vmem_limit_bytes=...) if tb is pushed to >=4096
    # (v5e default scoped limit is 16 MiB) or the width grows substantially.
    q = pl.pallas_call(
        kernel,
        out_shape=jax.ShapeDtypeStruct((b_pad, n_actions), jnp.float32),
        grid=(num_tiles,),
        in_specs=[pl.BlockSpec((tb, F), lambda i: (i, 0))] + weight_specs,
        out_specs=pl.BlockSpec((tb, n_actions), lambda i: (i, 0)),
        compiler_params=pltpu.CompilerParams(
            dimension_semantics=("parallel",),      # batch tiles are independent
        ),
        cost_estimate=pl.CostEstimate(
            flops=flops, transcendentals=0, bytes_accessed=bytes_accessed),
    )(state, *fused)

    return q[:B] if b_pad != B else q


def init_params(key, input_dim, width, n_actions, depth=2):
    """Deterministic synthetic init. Weights stored (in, out); biases as (1, out)."""
    assert depth == 2, "kernel is written for depth=2 base stream"
    keys = jax.random.split(key, 6)

    def layer(k, n_in, n_out):
        kw, kb = jax.random.split(k)
        scale = 1.0 / jnp.sqrt(jnp.float32(n_in))
        w = jax.random.uniform(kw, (n_in, n_out), jnp.float32, -scale, scale)
        b = jax.random.uniform(kb, (1, n_out), jnp.float32, -scale, scale)
        return w, b

    wb0, bb0 = layer(keys[0], input_dim, width)   # base layer 0
    wb1, bb1 = layer(keys[1], width, width)       # base layer 1
    wv0, bv0 = layer(keys[2], width, width)       # V hidden
    wv1, bv1 = layer(keys[3], width, 1)           # V out
    wa0, ba0 = layer(keys[4], width, width)       # A hidden
    wa1, ba1 = layer(keys[5], width, n_actions)   # A out
    return (wb0, bb0, wb1, bb1, wv0, bv0, wv1, bv1, wa0, ba0, wa1, ba1)


def reference_forward(state, params):
    """Pure-JAX f32 reference mirroring the PyTorch forward."""
    (wb0, bb0, wb1, bb1, wv0, bv0, wv1, bv1, wa0, ba0, wa1, ba1) = params
    h = jnp.maximum(state @ wb0 + bb0, 0.0)
    h = jnp.maximum(h @ wb1 + bb1, 0.0)
    v = jnp.maximum(h @ wv0 + bv0, 0.0) @ wv1 + bv1
    a = jnp.maximum(h @ wa0 + ba0, 0.0) @ wa1 + ba1
    return v + a - a.mean(axis=1, keepdims=True)


# TODO(synk): noisy-linear (NoisyNet) variant of the V/A streams is not implemented;
# this kernel corresponds to noisy=False. Checkpoint save/load is host-side, not a kernel.

if __name__ == "__main__":
    key = jax.random.PRNGKey(0)
    k_params, k_state, k_state2 = jax.random.split(key, 3)

    input_dim = 16
    width = 32
    n_actions = 4
    params = init_params(k_params, input_dim, width, n_actions, depth=2)

    # Fuse / pad / bf16-cast the weights ONCE, outside the per-forward path.
    fused, n_act, _ = fuse_params(params)

    # bf16 matmul path (f32 accumulation) -> looser tolerances vs the f32 reference.
    ATOL, RTOL = 5e-2, 5e-2

    # Small-batch case (single grid step).
    batch = 8
    state = jax.random.normal(k_state, (batch, input_dim), jnp.float32)
    q = jax.block_until_ready(duel_mlp_forward(state, fused, n_act))
    q_ref = reference_forward(state, params)
    assert q.shape == (batch, n_actions)
    assert jnp.allclose(q, q_ref, atol=ATOL, rtol=RTOL), "mismatch vs reference (small batch)"

    # Larger, non-tile-aligned batch: exercises padding + the >=2-step (dual-TC) grid path.
    batch2 = 300
    state2 = jax.random.normal(k_state2, (batch2, input_dim), jnp.float32)
    q2 = jax.block_until_ready(duel_mlp_forward(state2, fused, n_act))
    q2_ref = reference_forward(state2, params)
    assert q2.shape == (batch2, n_actions)
    assert jnp.allclose(q2, q2_ref, atol=ATOL, rtol=RTOL), "mismatch vs reference (large batch)"

    print("KERNEL_OK")
</pallas_src>

<mosaic_0001>
module attributes {stable_mosaic.version = 11 : i64} {
  func.func @duel_mlp_kernel(%arg0: i32, %arg1: memref<8x16xf32, #tpu.memory_space<vmem>>, %arg2: memref<16x32xbf16, #tpu.memory_space<vmem>>, %arg3: memref<1x32xf32, #tpu.memory_space<vmem>>, %arg4: memref<32x32xbf16, #tpu.memory_space<vmem>>, %arg5: memref<1x32xf32, #tpu.memory_space<vmem>>, %arg6: memref<32x64xbf16, #tpu.memory_space<vmem>>, %arg7: memref<1x64xf32, #tpu.memory_space<vmem>>, %arg8: memref<64x128xbf16, #tpu.memory_space<vmem>>, %arg9: memref<1x128xf32, #tpu.memory_space<vmem>>, %arg10: memref<8x4xf32, #tpu.memory_space<vmem>>) attributes {dimension_semantics = [#tpu.dimension_semantics<parallel>], iteration_bounds = array<i64: 1>, scalar_prefetch = 0 : i64, scratch_operands = 0 : i64, tpu.core_type = #tpu.core_type<tc>, window_params = [{transform_indices = @transform_0, window_bounds = array<i64: 8, 16>}, {pipeline_mode = #tpu.pipeline_mode<synchronous>, transform_indices = @transform_1, window_bounds = array<i64: 16, 32>}, {pipeline_mode = #tpu.pipeline_mode<synchronous>, transform_indices = @transform_2, window_bounds = array<i64: 1, 32>}, {pipeline_mode = #tpu.pipeline_mode<synchronous>, transform_indices = @transform_3, window_bounds = array<i64: 32, 32>}, {pipeline_mode = #tpu.pipeline_mode<synchronous>, transform_indices = @transform_4, window_bounds = array<i64: 1, 32>}, {pipeline_mode = #tpu.pipeline_mode<synchronous>, transform_indices = @transform_5, window_bounds = array<i64: 32, 64>}, {pipeline_mode = #tpu.pipeline_mode<synchronous>, transform_indices = @transform_6, window_bounds = array<i64: 1, 64>}, {pipeline_mode = #tpu.pipeline_mode<synchronous>, transform_indices = @transform_7, window_bounds = array<i64: 64, 128>}, {pipeline_mode = #tpu.pipeline_mode<synchronous>, transform_indices = @transform_8, window_bounds = array<i64: 1, 128>}, {transform_indices = @transform_9, window_bounds = array<i64: 8, 4>}]} {
    %c0 = arith.constant 0 : index
    %c0_0 = arith.constant 0 : index
    %0 = vector.load %arg1[%c0, %c0_0] : memref<8x16xf32, #tpu.memory_space<vmem>>, vector<8x16xf32>
    %1 = arith.truncf %0 : vector<8x16xf32> to vector<8x16xbf16>
    %c0_1 = arith.constant 0 : index
    %c0_2 = arith.constant 0 : index
    %2 = vector.load %arg2[%c0_1, %c0_2] : memref<16x32xbf16, #tpu.memory_space<vmem>>, vector<16x32xbf16>
    %cst = arith.constant dense<0.000000e+00> : vector<8x32xf32>
    %3 = tpu.matmul %1, %2, %cst {dimension_numbers = #tpu.dot_dimension_numbers<[1], [0], [0], [1], [0, 0, 1, 1], [], []>} : vector<8x16xbf16>, vector<16x32xbf16>, vector<8x32xf32> -> vector<8x32xf32>
    %c0_3 = arith.constant 0 : index
    %c0_4 = arith.constant 0 : index
    %4 = vector.load %arg3[%c0_3, %c0_4] : memref<1x32xf32, #tpu.memory_space<vmem>>, vector<1x32xf32>
    %5 = vector.broadcast %4 : vector<1x32xf32> to vector<8x32xf32>
    %6 = arith.addf %3, %5 : vector<8x32xf32>
    %cst_5 = arith.constant 0.000000e+00 : f32
    %7 = vector.broadcast %cst_5 : f32 to vector<8x32xf32>
    %8 = arith.maximumf %6, %7 : vector<8x32xf32>
    %9 = arith.truncf %8 : vector<8x32xf32> to vector<8x32xbf16>
    %c0_6 = arith.constant 0 : index
    %c0_7 = arith.constant 0 : index
    %10 = vector.load %arg4[%c0_6, %c0_7] : memref<32x32xbf16, #tpu.memory_space<vmem>>, vector<32x32xbf16>
    %cst_8 = arith.constant dense<0.000000e+00> : vector<8x32xf32>
    %11 = tpu.matmul %9, %10, %cst_8 {dimension_numbers = #tpu.dot_dimension_numbers<[1], [0], [0], [1], [0, 0, 1, 1], [], []>} : vector<8x32xbf16>, vector<32x32xbf16>, vector<8x32xf32> -> vector<8x32xf32>
    %c0_9 = arith.constant 0 : index
    %c0_10 = arith.constant 0 : index
    %12 = vector.load %arg5[%c0_9, %c0_10] : memref<1x32xf32, #tpu.memory_space<vmem>>, vector<1x32xf32>
    %13 = vector.broadcast %12 : vector<1x32xf32> to vector<8x32xf32>
    %14 = arith.addf %11, %13 : vector<8x32xf32>
    %cst_11 = arith.constant 0.000000e+00 : f32
    %15 = vector.broadcast %cst_11 : f32 to vector<8x32xf32>
    %16 = arith.maximumf %14, %15 : vector<8x32xf32>
    %17 = arith.truncf %16 : vector<8x32xf32> to vector<8x32xbf16>
    %c0_12 = arith.constant 0 : index
    %c0_13 = arith.constant 0 : index
    %18 = vector.load %arg6[%c0_12, %c0_13] : memref<32x64xbf16, #tpu.memory_space<vmem>>, vector<32x64xbf16>
    %cst_14 = arith.constant dense<0.000000e+00> : vector<8x64xf32>
    %19 = tpu.matmul %17, %18, %cst_14 {dimension_numbers = #tpu.dot_dimension_numbers<[1], [0], [0], [1], [0, 0, 1, 1], [], []>} : vector<8x32xbf16>, vector<32x64xbf16>, vector<8x64xf32> -> vector<8x64xf32>
    %c0_15 = arith.constant 0 : index
    %c0_16 = arith.constant 0 : index
    %20 = vector.load %arg7[%c0_15, %c0_16] : memref<1x64xf32, #tpu.memory_space<vmem>>, vector<1x64xf32>
    %21 = vector.broadcast %20 : vector<1x64xf32> to vector<8x64xf32>
    %22 = arith.addf %19, %21 : vector<8x64xf32>
    %cst_17 = arith.constant 0.000000e+00 : f32
    %23 = vector.broadcast %cst_17 : f32 to vector<8x64xf32>
    %24 = arith.maximumf %22, %23 : vector<8x64xf32>
    %25 = arith.truncf %24 : vector<8x64xf32> to vector<8x64xbf16>
    %c0_18 = arith.constant 0 : index
    %c0_19 = arith.constant 0 : index
    %26 = vector.load %arg8[%c0_18, %c0_19] : memref<64x128xbf16, #tpu.memory_space<vmem>>, vector<64x128xbf16>
    %cst_20 = arith.constant dense<0.000000e+00> : vector<8x128xf32>
    %27 = tpu.matmul %25, %26, %cst_20 {dimension_numbers = #tpu.dot_dimension_numbers<[1], [0], [0], [1], [0, 0, 1, 1], [], []>} : vector<8x64xbf16>, vector<64x128xbf16>, vector<8x128xf32> -> vector<8x128xf32>
    %c0_21 = arith.constant 0 : index
    %c0_22 = arith.constant 0 : index
    %28 = vector.load %arg9[%c0_21, %c0_22] : memref<1x128xf32, #tpu.memory_space<vmem>>, vector<1x128xf32>
    %29 = vector.broadcast %28 : vector<1x128xf32> to vector<8x128xf32>
    %30 = arith.addf %27, %29 : vector<8x128xf32>
    %31 = vector.extract_strided_slice %30 {offsets = [0, 4], sizes = [8, 1], strides = [1, 1]} : vector<8x128xf32> to vector<8x1xf32>
    %cst_23 = arith.constant dense<0.000000e+00> : vector<8xf32>
    %32 = vector.multi_reduction <add>, %30, %cst_23 [1] : vector<8x128xf32> to vector<8xf32>
    %33 = vector.shape_cast %32 : vector<8xf32> to vector<8x1xf32>
    %34 = arith.subf %33, %31 : vector<8x1xf32>
    %cst_24 = arith.constant 2.500000e-01 : f32
    %35 = vector.broadcast %cst_24 : f32 to vector<8x1xf32>
    %36 = arith.mulf %34, %35 : vector<8x1xf32>
    %37 = vector.extract_strided_slice %30 {offsets = [0, 0], sizes = [8, 4], strides = [1, 1]} : vector<8x128xf32> to vector<8x4xf32>
    %38 = vector.broadcast %31 : vector<8x1xf32> to vector<8x4xf32>
    %39 = arith.addf %37, %38 : vector<8x4xf32>
    %40 = vector.broadcast %36 : vector<8x1xf32> to vector<8x4xf32>
    %41 = arith.subf %39, %40 : vector<8x4xf32>
    %c0_25 = arith.constant 0 : index
    %c0_26 = arith.constant 0 : index
    %42 = vector.load %arg10[%c0_25, %c0_26] : memref<8x4xf32, #tpu.memory_space<vmem>>, vector<8x4xf32>
    tpu.vector_store %arg10[%c0_25, %c0_26], %41 {strides = array<i32>} : memref<8x4xf32, #tpu.memory_space<vmem>>, vector<8x4xf32>,
    return
  }
  func.func @transform_0(%arg0: i32) -> (i32, i32) {
    %c0_i32 = arith.constant 0 : i32
    %c0_i32_0 = arith.constant 0 : i32
    return %arg0, %c0_i32 : i32, i32
  }
  func.func @transform_1(%arg0: i32) -> (i32, i32) {
    %c0_i32 = arith.constant 0 : i32
    %c0_i32_0 = arith.constant 0 : i32
    %c0_i32_1 = arith.constant 0 : i32
    return %c0_i32, %c0_i32_0 : i32, i32
  }
  func.func @transform_2(%arg0: i32) -> (i32, i32) {
    %c0_i32 = arith.constant 0 : i32
    %c0_i32_0 = arith.constant 0 : i32
    %c0_i32_1 = arith.constant 0 : i32
    return %c0_i32, %c0_i32_0 : i32, i32
  }
  func.func @transform_3(%arg0: i32) -> (i32, i32) {
    %c0_i32 = arith.constant 0 : i32
    %c0_i32_0 = arith.constant 0 : i32
    %c0_i32_1 = arith.constant 0 : i32
    return %c0_i32, %c0_i32_0 : i32, i32
  }
  func.func @transform_4(%arg0: i32) -> (i32, i32) {
    %c0_i32 = arith.constant 0 : i32
    %c0_i32_0 = arith.constant 0 : i32
    %c0_i32_1 = arith.constant 0 : i32
    return %c0_i32, %c0_i32_0 : i32, i32
  }
  func.func @transform_5(%arg0: i32) -> (i32, i32) {
    %c0_i32 = arith.constant 0 : i32
    %c0_i32_0 = arith.constant 0 : i32
    %c0_i32_1 = arith.constant 0 : i32
    return %c0_i32, %c0_i32_0 : i32, i32
  }
  func.func @transform_6(%arg0: i32) -> (i32, i32) {
    %c0_i32 = arith.constant 0 : i32
    %c0_i32_0 = arith.constant 0 : i32
    %c0_i32_1 = arith.constant 0 : i32
    return %c0_i32, %c0_i32_0 : i32, i32
  }
  func.func @transform_7(%arg0: i32) -> (i32, i32) {
    %c0_i32 = arith.constant 0 : i32
    %c0_i32_0 = arith.constant 0 : i32
    %c0_i32_1 = arith.constant 0 : i32
    return %c0_i32, %c0_i32_0 : i32, i32
  }
  func.func @transform_8(%arg0: i32) -> (i32, i32) {
    %c0_i32 = arith.constant 0 : i32
    %c0_i32_0 = arith.constant 0 : i32
    %c0_i32_1 = arith.constant 0 : i32
    return %c0_i32, %c0_i32_0 : i32, i32
  }
  func.func @transform_9(%arg0: i32) -> (i32, i32) {
    %c0_i32 = arith.constant 0 : i32
    %c0_i32_0 = arith.constant 0 : i32
    return %arg0, %c0_i32 : i32, i32
  }
}

</mosaic_0001>

<bundles_post_ra>
// kernel: tpu_custom_call.1
= control target key start
LH: loop header
LB: loop body
LE: loop exit
PB: predicated region body
PF: predicated region fallthrough
CT: control target
= control target key end

     0   :  { %14 = vsyncpa [#allocation3], 0  ;;  %s715_s0 = inlined_call_operand.hbm [shape: f32[8,16], index: 0, kind: input, shape index: {}]   ;;  %s716_s1 = inlined_call_operand.hbm [shape: bf16[16,32], index: 1, kind: input, shape index: {}]   ;;  %s717_s2 = inlined_call_operand.vmem [shape: f32[1,32], index: 2, kind: input, shape index: {}]   ;;  %s718_s3 = inlined_call_operand.hbm [shape: bf16[32,32], index: 3, kind: input, shape index: {}]   ;;  %s719_s4 = inlined_call_operand.vmem [shape: f32[1,32], index: 4, kind: input, shape index: {}]   ;;  %s720_s5 = inlined_call_operand.vmem [shape: bf16[32,64], index: 5, kind: input, shape index: {}]   ;;  %s721_s6 = inlined_call_operand.vmem [shape: f32[1,64], index: 6, kind: input, shape index: {}]   ;;  %s722_s7 = inlined_call_operand.hbm [shape: bf16[64,128], index: 7, kind: input, shape index: {}]   ;;  %s723_s8 = inlined_call_operand.vmem [shape: f32[1,128], index: 8, kind: input, shape index: {}]   ;;  %s724_s9 = inlined_call_operand.vmem [shape: f32[8,4], index: 9, kind: output, shape index: {}]  }
   0x1   :  { %15 = vsyncpa [#allocation5], 0 }
   0x2   :  { %16 = vsyncpa [#allocation8], 0  ;;  %s572_s30 = smov [#allocation4]   ;;  %s478_s13 = scalar_lea.hbm %s716_s1, 128 }
   0x3   :  { %s32_s10 = sshll.u32 %s572_s30, 4  ;;  %p479_p0 = scmp.ne.s32.totalorder %s716_s1, %s478_s13  ;;  %s33_s10 = int_to_ptr.vmem [resolvable:$true] %s32_s10 }
   0x4   :  { %p482_p1 = scmp.lt.u32.totalorder %s478_s13, %s716_s1 }
   0x6   :  { %p484_p2 = pnand %p482_p1, %p479_p0 }
   0x8   :  { %487 = shalt.err (!%p484_p2)
}
   0x9   :  { %s488_s18 = scalar_lea.vmem %s33_s10, 128  ;;  %p493_p4 = scmp.lt.s32.totalorder %s33_s10, %s33_s10 }
   0xa   :  { %p489_p3 = scmp.ne.s32.totalorder %s33_s10, %s488_s18  ;;  %p494_p5 = scmp.lt.s32.totalorder %s488_s18, %s488_s18 }
   0xc   :  { %p495_p6 = por %p494_p5, %p493_p4 }
   0xe   :  { %p496_p7 = pnand %p495_p6, %p489_p3 }
  0x10   :  { %499 = shalt.err (!%p496_p7)
}
  0x11   :  { %s573_s19 = smov 64   ;;  %s574_s20 = smov 4  }
  0x12   :  { %38 = dma.hbm_to_vmem [thread:$0]  %s716_s1, 128, %s33_s10, [#allocation5], %s573_s19, %s573_s19, %s574_s20  }
  0x13   :  { %s575_s23 = smov [#allocation2]   ;;  %s576_s25 = smov [#allocation6]  }
  0x14   :  { %s23_s24 = sshll.u32 %s575_s23, 4  ;;  %s46_s26 = sshll.u32 %s576_s25, 4  ;;  %s24_s24 = int_to_ptr.vmem [resolvable:$true] %s23_s24  ;;  %s47_s26 = int_to_ptr.vmem [resolvable:$true] %s46_s26 }
  0x15   :  { %s500_s29 = scalar_lea.hbm %s715_s0, 128 }
  0x16   :  { %p501_p8 = scmp.ne.s32.totalorder %s715_s0, %s500_s29  ;;  %p504_p9 = scmp.lt.u32.totalorder %s500_s29, %s715_s0 }
  0x18   :  { %p506_p10 = pnand %p504_p9, %p501_p8 }
  0x1a   :  { %509 = shalt.err (!%p506_p10)
}
  0x1b   :  { %s510_s1 = scalar_lea.vmem %s24_s24, 128  ;;  %p515_p12 = scmp.lt.s32.totalorder %s24_s24, %s24_s24 }
  0x1c   :  { %p511_p11 = scmp.ne.s32.totalorder %s24_s24, %s510_s1  ;;  %p516_p13 = scmp.lt.s32.totalorder %s510_s1, %s510_s1 }
  0x1e   :  { %p517_p0 = por %p516_p13, %p515_p12 }
  0x20   :  { %p518_p1 = pnand %p517_p0, %p511_p11 }
  0x22   :  { %521 = shalt.err (!%p518_p1)
}
  0x23   :  { %26 = dma.hbm_to_vmem [thread:$0]  %s715_s0, 128, %s24_s24, [#allocation3]  }
  0x24   :  { %s522_s17 = scalar_lea.hbm %s718_s3, 256 }
  0x25   :  { %p523_p2 = scmp.ne.s32.totalorder %s718_s3, %s522_s17  ;;  %p526_p3 = scmp.lt.u32.totalorder %s522_s17, %s718_s3 }
  0x27   :  { %p528_p4 = pnand %p526_p3, %p523_p2 }
  0x29   :  { %531 = shalt.err (!%p528_p4)
}
  0x2a   :  { %s532_s25 = scalar_lea.vmem %s47_s26, 256  ;;  %p537_p6 = scmp.lt.s32.totalorder %s47_s26, %s47_s26 }
  0x2b   :  { %p533_p5 = scmp.ne.s32.totalorder %s47_s26, %s532_s25  ;;  %p538_p7 = scmp.lt.s32.totalorder %s532_s25, %s532_s25 }
  0x2d   :  { %p539_p8 = por %p538_p7, %p537_p6 }
  0x2f   :  { %p540_p9 = pnand %p539_p8, %p533_p5 }
  0x31   :  { %543 = shalt.err (!%p540_p9)
}
  0x32   :  { %52 = dma.hbm_to_vmem [thread:$0]  %s718_s3, 256, %s47_s26, [#allocation5], %s573_s19, %s573_s19, %s574_s20  }
  0x33   :  { %s577_s27 = smov [#allocation7]   ;;  %s544_s11 = scalar_lea.hbm %s722_s7, 512 }
  0x34   :  { %s64_s28 = sshll.u32 %s577_s27, 4  ;;  %p545_p10 = scmp.ne.s32.totalorder %s722_s7, %s544_s11  ;;  %s65_s28 = int_to_ptr.vmem [resolvable:$true] %s64_s28 }
  0x35   :  { %p548_p11 = scmp.lt.u32.totalorder %s544_s11, %s722_s7 }
  0x37   :  { %p550_p12 = pnand %p548_p11, %p545_p10 }
  0x39   :  { %553 = shalt.err (!%p550_p12)
}
  0x3a   :  { %s554_s14 = scalar_lea.vmem %s65_s28, 512  ;;  %p559_p0 = scmp.lt.s32.totalorder %s65_s28, %s65_s28 }
  0x3b   :  { %p555_p13 = scmp.ne.s32.totalorder %s65_s28, %s554_s14  ;;  %p560_p1 = scmp.lt.s32.totalorder %s554_s14, %s554_s14 }
  0x3d   :  { %p561_p2 = por %p560_p1, %p559_p0 }
  0x3f   :  { %p562_p3 = pnand %p561_p2, %p555_p13 }
  0x41   :  { %565 = shalt.err (!%p562_p3)
}
  0x42   :  { %70 = dma.hbm_to_vmem [thread:$0]  %s722_s7, 512, %s65_s28, [#allocation8], %s573_s19, %s573_s19, %s574_s20  }
  0x43   :  { %566 = dma.done.wait [#allocation3], 128  }
  0x44   :  { %567 = vsyncadd [#allocation3], 4294967168 }
  0x45   :  { %568 = dma.done.wait [#allocation5], 384  }
  0x46   :  { %569 = vsyncadd [#allocation5], 4294966912 }
  0x47   :  { %570 = dma.done.wait [#allocation8], 512  }
  0x48   :  { %571 = vsyncadd [#allocation8], 4294966784  ;;  %v578_v0 = vmov 0.0   ;;  %vm579_vm0 = vmmov 0   ;;  %v469_v1 = vld [vmem:[#allocation4] sm:$0xff]   ;;  %v86_v2 = vld [vmem:[#allocation2] sm:$0xff] }
  0x49   :  { %424 = vmatprep.subr.bf16.mxu0 %v578_v0  ;;  %426 = vmatprep.mubr.msk.bf16.mxu0 %vm579_vm0, %v578_v0  ;;  %v87_v3 = vpack.c.bf16 %v86_v2, %v86_v2  ;;  %vm103_vm1 = vcmask 130048   ;;  %v470_v4 = vld [vmem:[#allocation6] sm:$0xff]   ;;  %v471_v5 = vld [vmem:[#allocation6 + $0x8] sm:$0xff]   ;;  %v394_v6 = vld [vmem:[%s717_s2] ss:$0 sm:$0xff]  ;;  %vm172_vm2 = vcmask 261120  }
  0x4a   :  { %446 = vmatprep.subr.bf16.mxu1 %v578_v0  ;;  %454 = vmatprep.mubr.msk.bf16.mxu1 %vm579_vm0, %v578_v0  ;;  %v472_v13 = vld [vmem:[%s720_s5] sm:$0xff]   ;;  %v473_v15 = vld [vmem:[%s720_s5 + $0x8] sm:$0xff]   ;;  %v474_v16 = vld [vmem:[#allocation7] sm:$0xff]   ;;  %vm325_vm3 = vcmask 523264   ;;  %v580_v36 = vmov 4   ;;  %vm385_vm4 = vcmask 31744  }
  0x4b   :  { %425 = vmatpush3.bf16.msra.mxu0 %v469_v1  ;;  %447 = vmatpush3.bf16.msra.mxu1 %v474_v16  ;;  %v475_v17 = vld [vmem:[#allocation7 + $0x8] sm:$0xff]   ;;  %v476_v26 = vld [vmem:[#allocation7 + $0x10] sm:$0xff]   ;;  %v477_v27 = vld [vmem:[#allocation7 + $0x18] sm:$0xff]  }
  0x4c   :  { %430 = vmatprep.subr.bf16.mxu0 %v578_v0  ;;  %448 = vmatprep.subr.bf16.mxu1 %v578_v0  ;;  %v397_v18 = vld [vmem:[%s719_s4] ss:$0 sm:$0xff] }
  0x4d   :  { %v401_v28 = vld [vmem:[%s721_s6] ss:$0 sm:$0xff]  ;;  %467 = vset.pattern.permute.xlu0 %v580_v36  ;;  %468 = vset.pattern.permute.xlu1 %v580_v36 }
  0x4e   :  { %427 = vmatmul.mubr.msk.bf16.vlgmr.msra.gmra.mrb[0].mxu0 %vm103_vm1, %v87_v3  ;;  %v405_v37 = vld [vmem:[%s723_s8] ss:$0 sm:$0xff] }
  0x4f   :  { %431 = vmatpush3.bf16.msra.mxu0 %v470_v4  ;;  %434 = vmatprep.mubr.msk.bf16.mxu0 %vm579_vm0, %v578_v0 }
  0x50   :  { %432 = vmatprep.subr.bf16.mxu0 %v578_v0  ;;  %449 = vmatpush3.bf16.msra.mxu1 %v475_v17 }
  0x51   :  { %450 = vmatprep.subr.bf16.mxu1 %v578_v0 }
  0x53   :  { %433 = vmatpush3.bf16.msra.mxu0 %v471_v5 }
  0x54   :  { %438 = vmatprep.subr.bf16.mxu0 %v578_v0  ;;  %451 = vmatpush3.bf16.msra.mxu1 %v476_v26 }
  0x55   :  { %452 = vmatprep.subr.bf16.mxu1 %v578_v0 }
  0x58   :  { %453 = vmatpush3.bf16.msra.mxu1 %v477_v27 }
 0x121   :  { %v141_v7 = vpop.f32.mrb[0].mxu0 }
 0x122   :  { %v142_v8 = vadd.f32 %v394_v6, %v141_v7  ;;  %v428_v9 = vpop.f32.mrb[1].mxu0 }
 0x123   :  { %v144_v10 = vpop.f32.mrb[2].mxu0 }
 0x124   :  { %v147_v11 = vmax.f32 %v142_v8, 0.0  ;;  %v429_v12 = vpop.f32.mrb[3].mxu0 }
 0x126   :  { %v148_v14 = vpack.c.bf16 %v147_v11, %v147_v11 }
 0x128   :  { %435 = vmatmul.mubr.msk.bf16.vlgmr.msra.gmra.mrb[4].mxu0 %vm172_vm2, %v148_v14 }
 0x129   :  { %439 = vmatpush3.bf16.msra.mxu0 %v472_v13  ;;  %442 = vmatprep.mubr.msk.bf16.mxu0 %vm579_vm0, %v578_v0 }
 0x12a   :  { %440 = vmatprep.subr.bf16.mxu0 %v578_v0 }
 0x12d   :  { %441 = vmatpush3.bf16.msra.mxu0 %v473_v15 }
 0x1fb   :  { %v210_v19 = vpop.f32.mrb[4].mxu0 }
 0x1fc   :  { %v211_v20 = vadd.f32 %v397_v18, %v210_v19  ;;  %v436_v21 = vpop.f32.mrb[5].mxu0 }
 0x1fd   :  { %v213_v22 = vpop.f32.mrb[6].mxu0 }
 0x1fe   :  { %v216_v23 = vmax.f32 %v211_v20, 0.0  ;;  %v437_v24 = vpop.f32.mrb[7].mxu0 }
 0x200   :  { %v217_v25 = vpack.c.bf16 %v216_v23, %v216_v23 }
 0x202   :  { %443 = vmatmul.mubr.msk.bf16.vlgmr.msra.gmra.mrb[8].mxu0 %vm172_vm2, %v217_v25 }
 0x2d5   :  { %v278_v29 = vpop.f32.mrb[8].mxu0 }
 0x2d6   :  { %v279_v30 = vadd.f32 %v401_v28, %v278_v29  ;;  %v444_v31 = vpop.f32.mrb[9].mxu0 }
 0x2d7   :  { %v281_v32 = vpop.f32.mrb[10].mxu0 }
 0x2d8   :  { %v284_v33 = vmax.f32 %v279_v30, 0.0  ;;  %v445_v34 = vpop.f32.mrb[11].mxu0 }
 0x2da   :  { %v285_v35 = vpack.c.bf16 %v284_v33, %v284_v33 }
 0x2dc   :  { %455 = vmatmul.mubr.msk.bf16.vlgmr.msra.gmra.mrb[0].mxu1 %vm325_vm3, %v285_v35 }
 0x3af   :  { %v363_v38 = vpop.f32.mrb[0].mxu1 }
 0x3b0   :  { %v364_v39 = vadd.f32 %v405_v37, %v363_v38  ;;  %v456_v40 = vpop.f32.mrb[1].mxu1 }
 0x3b1   :  { %v366_v41 = vpop.f32.mrb[2].mxu1 }
 0x3b2   :  { %369 = vadd.xlane.f32.xlu0 %v364_v39  ;;  %v457_v42 = vpop.f32.mrb[3].mxu1 }
 0x3c8   :  { %375 = vperm.xlu0 %467, %v364_v39  }
 0x43f   :  { %v370_v43 = vpop.xlane.xlu0 %369 }
 0x440   :  { %v371_v44 = vsub.f32 %v370_v43, %v364_v39 }
 0x442   :  { %v372_v45 = vmul.f32 0.25, %v371_v44 }
 0x444   :  { %381 = vperm.xlu1 %468, %v372_v45  }
 0x447   :  { %v376_v46 = vpop.permute.xlu0 %375 }
 0x448   :  { %v378_v47 = vadd.f32 %v376_v46, %v364_v39 }
 0x4c3   :  { %v382_v48 = vpop.permute.xlu1 %381 }
 0x4c4   :  { %v384_v49 = vsub.f32 %v378_v47, %v382_v48 }
 0x4c6   :  { %386 = vst.msk [vmem:[%s724_s9] sm:$0xff] %vm385_vm4, %v384_v49 }
 0x4c7   :  { %391 = vsyncpa [#allocation3], 1 }
 0x4c8   :  { %392 = vsyncpa [#allocation5], 1 }
 0x4c9   :  { %393 = vsyncpa [#allocation8], 1 }

</bundles_post_ra>
